<compile_context>
chip_gen: v5e
topology: v5e:2x2
jax: 0.10.0
libtpu: 0.0.40
codegen_flags: <defaults>
</compile_context>

<pallas_src>
import jax
import jax.numpy as jnp
import numpy as np
from jax.experimental import pallas as pl
from jax.experimental.pallas import tpu as pltpu

BN_EPS = 1e-5
K1 = 3   # temporal kernel of the shared per-view conv  (build_view_convs k1)
K2 = 5   # temporal kernel of the per-task conv         (build_task_convs k1)


# ---------------------------------------------------------------------------
# Fused Pallas kernel: the whole forward = 2 MXU GEMMs + VPU bias/ReLU
# ---------------------------------------------------------------------------
def _fused_forward_kernel(x_ref, w1_ref, b1_ref, g2_ref, b2_ref, o_ref):
    """One batch tile of the ConvMultiView forward.

    x_ref : (TB, J)  x in its NATIVE flatten order, J = Tn*V*W*S
    w1_ref: (J, M)   banded shared-conv weights (BN eval scale folded),
                     block-diagonal over views, M = V*Tn*W1
    b1_ref: (1, M)   folded shared-conv + BatchNorm bias
    g2_ref: (M, N)   task conv fused with Linear, block-diagonal over tasks,
                     N = Tn*output_dim
    b2_ref: (1, N)   fused task-conv/Linear bias
    o_ref : (TB, N)  task-t logits live in columns [t*O, (t+1)*O)
    """
    y = jnp.dot(x_ref[...], w1_ref[...], preferred_element_type=jnp.float32)
    # BatchNorm(eval) is already folded into w1/b1; Dropout(p=0.2) is identity
    # at inference.  TODO(synk): training-mode BN/Dropout are not supported.
    y = jnp.maximum(y + b1_ref[...], 0.0)
    o_ref[...] = (jnp.dot(y, g2_ref[...], preferred_element_type=jnp.float32)
                  + b2_ref[...])


# ---------------------------------------------------------------------------
# Parameters (deterministic, synthetic — shapes follow the PyTorch __init__)
# ---------------------------------------------------------------------------
def init_params(key, num_tasks, num_views, sensor_dim, hidden_dim, output_dim):
    ks = jax.random.split(key, 6)
    return {
        # nn.Conv2d(num_tasks, num_tasks, (sensor_dim, 3)) per view
        "view_conv_w": 0.1 * jax.random.normal(
            ks[0], (num_views, num_tasks, num_tasks, sensor_dim, K1), jnp.float32),
        "view_conv_b": 0.1 * jax.random.normal(ks[1], (num_views, num_tasks), jnp.float32),
        # nn.Conv2d(1, 1, (num_views, 5)) per task
        "task_conv_w": 0.1 * jax.random.normal(
            ks[2], (num_tasks, 1, 1, num_views, K2), jnp.float32),
        "task_conv_b": 0.1 * jax.random.normal(ks[3], (num_tasks,), jnp.float32),
        # nn.Linear(hidden_dim, output_dim) per task (PyTorch weight: (out, in))
        "lin_w": 0.1 * jax.random.normal(ks[4], (num_tasks, output_dim, hidden_dim), jnp.float32),
        "lin_b": 0.1 * jax.random.normal(ks[5], (num_tasks, output_dim), jnp.float32),
        # nn.BatchNorm1d(num_tasks) per view, eval-mode stats (PyTorch default init)
        "bn_gamma": jnp.ones((num_views, num_tasks), jnp.float32),
        "bn_beta":  jnp.zeros((num_views, num_tasks), jnp.float32),
        "bn_mean":  jnp.zeros((num_views, num_tasks), jnp.float32),
        "bn_var":   jnp.ones((num_views, num_tasks), jnp.float32),
    }


# ---------------------------------------------------------------------------
# Params-only preparation (done once, outside the per-step hot path)
# ---------------------------------------------------------------------------
def prepare_kernel_params(params, window_size):
    view_w = np.asarray(params["view_conv_w"], np.float32)   # (V, To, Ti, S, K1)
    view_b = np.asarray(params["view_conv_b"], np.float32)   # (V, To)
    task_w = np.asarray(params["task_conv_w"], np.float32)   # (Tn, 1, 1, V, K2)
    task_b = np.asarray(params["task_conv_b"], np.float32)   # (Tn,)
    lin_w = np.asarray(params["lin_w"], np.float32)          # (Tn, O, H)
    lin_b = np.asarray(params["lin_b"], np.float32)          # (Tn, O)
    bn_g = np.asarray(params["bn_gamma"], np.float32)        # (V, Tn)
    bn_b = np.asarray(params["bn_beta"], np.float32)
    bn_m = np.asarray(params["bn_mean"], np.float32)
    bn_v = np.asarray(params["bn_var"], np.float32)

    V, Tn, _, S, k1 = view_w.shape
    O, H = lin_w.shape[1], lin_w.shape[2]
    k2 = task_w.shape[-1]
    W = window_size
    W1 = W - k1 + 1
    if H != W1 - k2 + 1:
        raise ValueError(
            f"hidden_dim={H} inconsistent with window_size={W}: forward implies "
            f"hidden_dim == window_size - (k1-1) - (k2-1) = {W1 - k2 + 1}")

    # --- BatchNorm1d (EVAL mode) folded per-channel into the shared conv -----
    scale = bn_g / np.sqrt(bn_v + BN_EPS)                    # (V, Tn)
    shift = bn_b - bn_m * scale                              # (V, Tn)

    # --- Stage 1: shared Conv2d as ONE banded GEMM ----------------------------
    # Rows follow x's NATIVE flatten order (ti, v, win, s); cols are (v, to, w1).
    w_scaled = view_w * scale[:, :, None, None, None]        # (V, To, Ti, S, K1)
    T = np.zeros((Tn, V, W, S, V, Tn, W1), np.float32)
    for v in range(V):
        for k in range(k1):
            blk = np.transpose(w_scaled[v, :, :, :, k], (1, 2, 0))   # (Ti, S, To)
            for w1 in range(W1):
                T[:, v, w1 + k, :, v, :, w1] = blk
    w1_mat = T.reshape(Tn * V * W * S, V * Tn * W1)

    b1_row = view_b * scale + shift                          # (V, To)
    b1_row = np.ascontiguousarray(
        np.broadcast_to(b1_row[:, :, None], (V, Tn, W1)).reshape(1, V * Tn * W1),
        np.float32)

    # --- Stage 2: Conv2d(1,1,(V,k2)) ∘ Flatten ∘ Linear as ONE block-diag GEMM
    tw = task_w.reshape(Tn, V, k2)
    lwT = np.transpose(lin_w, (0, 2, 1))                     # (Tn, H, O)
    G2 = np.zeros((Tn, V, W1, O), np.float32)
    for k in range(k2):
        G2[:, :, k:k + H, :] += tw[:, :, k][:, :, None, None] * lwT[:, None, :, :]
    Gbig = np.zeros((V, Tn, W1, Tn, O), np.float32)
    for t in range(Tn):
        Gbig[:, t, :, t, :] = G2[t]                          # (V, W1, O)
    g2_mat = Gbig.reshape(V * Tn * W1, Tn * O)

    b2_row = np.ascontiguousarray(
        (lin_b + task_b[:, None] * lwT.sum(axis=1)).reshape(1, Tn * O), np.float32)

    return {"w1": jnp.asarray(w1_mat), "b1": jnp.asarray(b1_row),
            "g2": jnp.asarray(g2_mat), "b2": jnp.asarray(b2_row)}


# ---------------------------------------------------------------------------
# Forward: pure reshape (no transpose), then a single batch-blocked pallas_call
# ---------------------------------------------------------------------------
def conv_multiview_forward(x, kparams):
    # x: (B, num_tasks, num_views, window_size, sensor_dim), matching PyTorch input
    B = x.shape[0]
    w1, b1, g2, b2 = kparams["w1"], kparams["b1"], kparams["g2"], kparams["b2"]
    J, M = w1.shape
    N = g2.shape[1]

    # Pure reshape: W1TOEP rows were built in x's native flatten order, so no
    # standalone transpose / im2col is needed on the activation path.
    x2d = x.reshape(B, J)

    tb = B if B <= 512 else 256          # batch tile (8-row aligned when tiled)
    grid = (pl.cdiv(B, tb),)

    flops = 2 * B * J * M + 2 * B * M * N
    bytes_accessed = 4 * (B * J + J * M + M + M * N + N + B * N)

    return pl.pallas_call(
        _fused_forward_kernel,
        out_shape=jax.ShapeDtypeStruct((B, N), jnp.float32),
        grid=grid,
        in_specs=[
            pl.BlockSpec((tb, J), lambda i: (i, 0)),
            pl.BlockSpec((J, M), lambda i: (0, 0)),
            pl.BlockSpec((1, M), lambda i: (0, 0)),
            pl.BlockSpec((M, N), lambda i: (0, 0)),
            pl.BlockSpec((1, N), lambda i: (0, 0)),
        ],
        out_specs=pl.BlockSpec((tb, N), lambda i: (i, 0)),
        compiler_params=pltpu.CompilerParams(
            dimension_semantics=("parallel",),            # shards batch on v7x's 2 TCs
            vmem_limit_bytes=32 * 1024 * 1024,            # explicit, portable v5e/v6e/v7x
        ),
        cost_estimate=pl.CostEstimate(
            flops=flops, transcendentals=0, bytes_accessed=bytes_accessed),
    )(x2d, w1, b1, g2, b2)


# ---------------------------------------------------------------------------
# Plain-JAX reference (direct conv formulation, no fusion) for validation
# ---------------------------------------------------------------------------
def reference_forward(x, params):
    B, Tn, V, W, S = x.shape
    k1 = params["view_conv_w"].shape[-1]
    k2 = params["task_conv_w"].shape[-1]
    W1 = W - k1 + 1
    H = W1 - k2 + 1
    scale = params["bn_gamma"] / jnp.sqrt(params["bn_var"] + BN_EPS)   # (V, Tn)
    shift = params["bn_beta"] - params["bn_mean"] * scale
    xT = jnp.swapaxes(x, 3, 4)                                        # (B, T, V, S, W)
    views = []
    for v in range(V):
        xv = xT[:, :, v]                                              # (B, Ti, S, W)
        w = params["view_conv_w"][v]                                  # (To, Ti, S, k1)
        conv = sum(jnp.einsum('bisw,ois->bow', xv[..., k:k + W1], w[..., k])
                   for k in range(k1))
        conv = conv + params["view_conv_b"][v][None, :, None]
        conv = conv * scale[v][None, :, None] + shift[v][None, :, None]
        views.append(jnp.maximum(conv, 0.0))                          # (B, T, W1)
    Mv = jnp.stack(views, axis=2)                                     # (B, T, V, W1)
    outs = []
    for t in range(Tn):
        mt = Mv[:, t]                                                 # (B, V, W1)
        wt = params["task_conv_w"][t, 0, 0]                           # (V, k2)
        h = sum(jnp.einsum('bvw,v->bw', mt[..., k:k + H], wt[:, k])
                for k in range(k2))
        h = h + params["task_conv_b"][t]                              # (B, H)
        y = h @ params["lin_w"][t].T + params["lin_b"][t]             # (B, O)
        outs.append(y)
    return outs


if __name__ == "__main__":
    # batch=2, num_tasks=3, num_views=2, window(seq_len)=16, sensor_dim=4, output_dim=5
    B, Tn, V, W, S, O = 2, 3, 2, 16, 4, 5
    H = W - (K1 - 1) - (K2 - 1)        # hidden_dim implied by the forward pass (=10)

    key = jax.random.PRNGKey(0)
    pkey, xkey = jax.random.split(key)
    params = init_params(pkey, Tn, V, S, H, O)
    x = jax.random.normal(xkey, (B, Tn, V, W, S), jnp.float32)

    # Params-only prep once (BN fold + conv->GEMM folding), then jitted forward.
    kparams = prepare_kernel_params(params, window_size=W)
    fwd = jax.jit(conv_multiview_forward)

    out = jax.block_until_ready(fwd(x, kparams))                      # (B, Tn*O)
    assert out.shape == (B, Tn * O)

    # Per-task list (matches the PyTorch forward's return), split outside jit.
    out_np = np.asarray(out)
    outs = [out_np[:, t * O:(t + 1) * O] for t in range(Tn)]

    refs = reference_forward(x, params)
    for o, r in zip(outs, refs):
        assert o.shape == (B, O)
        np.testing.assert_allclose(o, np.asarray(r), rtol=1e-4, atol=1e-5)

    print("KERNEL_OK")
</pallas_src>

<mosaic_0001>
module attributes {stable_mosaic.version = 11 : i64} {
  func.func @_fused_forward_kernel(%arg0: i32, %arg1: memref<2x384xf32, #tpu.memory_space<vmem>>, %arg2: memref<384x84xf32, #tpu.memory_space<vmem>>, %arg3: memref<1x84xf32, #tpu.memory_space<vmem>>, %arg4: memref<84x15xf32, #tpu.memory_space<vmem>>, %arg5: memref<1x15xf32, #tpu.memory_space<vmem>>, %arg6: memref<2x15xf32, #tpu.memory_space<vmem>>) attributes {dimension_semantics = [#tpu.dimension_semantics<parallel>], iteration_bounds = array<i64: 1>, scalar_prefetch = 0 : i64, scratch_operands = 0 : i64, tpu.core_type = #tpu.core_type<tc>, window_params = [{transform_indices = @transform_0, window_bounds = array<i64: 2, 384>}, {pipeline_mode = #tpu.pipeline_mode<synchronous>, transform_indices = @transform_1, window_bounds = array<i64: 384, 84>}, {pipeline_mode = #tpu.pipeline_mode<synchronous>, transform_indices = @transform_2, window_bounds = array<i64: 1, 84>}, {pipeline_mode = #tpu.pipeline_mode<synchronous>, transform_indices = @transform_3, window_bounds = array<i64: 84, 15>}, {pipeline_mode = #tpu.pipeline_mode<synchronous>, transform_indices = @transform_4, window_bounds = array<i64: 1, 15>}, {transform_indices = @transform_5, window_bounds = array<i64: 2, 15>}]} {
    %c0 = arith.constant 0 : index
    %c0_0 = arith.constant 0 : index
    %0 = vector.load %arg1[%c0, %c0_0] : memref<2x384xf32, #tpu.memory_space<vmem>>, vector<2x384xf32>
    %c0_1 = arith.constant 0 : index
    %c0_2 = arith.constant 0 : index
    %1 = vector.load %arg2[%c0_1, %c0_2] : memref<384x84xf32, #tpu.memory_space<vmem>>, vector<384x84xf32>
    %cst = arith.constant dense<0.000000e+00> : vector<2x84xf32>
    %2 = tpu.matmul %0, %1, %cst {dimension_numbers = #tpu.dot_dimension_numbers<[1], [0], [0], [1], [0, 0, 1, 1], [], []>} : vector<2x384xf32>, vector<384x84xf32>, vector<2x84xf32> -> vector<2x84xf32>
    %c0_3 = arith.constant 0 : index
    %c0_4 = arith.constant 0 : index
    %3 = vector.load %arg3[%c0_3, %c0_4] : memref<1x84xf32, #tpu.memory_space<vmem>>, vector<1x84xf32>
    %4 = vector.broadcast %3 : vector<1x84xf32> to vector<2x84xf32>
    %5 = arith.addf %2, %4 : vector<2x84xf32>
    %cst_5 = arith.constant 0.000000e+00 : f32
    %6 = vector.broadcast %cst_5 : f32 to vector<2x84xf32>
    %7 = arith.maximumf %5, %6 : vector<2x84xf32>
    %c0_6 = arith.constant 0 : index
    %c0_7 = arith.constant 0 : index
    %8 = vector.load %arg4[%c0_6, %c0_7] : memref<84x15xf32, #tpu.memory_space<vmem>>, vector<84x15xf32>
    %cst_8 = arith.constant dense<0.000000e+00> : vector<2x15xf32>
    %9 = tpu.matmul %7, %8, %cst_8 {dimension_numbers = #tpu.dot_dimension_numbers<[1], [0], [0], [1], [0, 0, 1, 1], [], []>} : vector<2x84xf32>, vector<84x15xf32>, vector<2x15xf32> -> vector<2x15xf32>
    %c0_9 = arith.constant 0 : index
    %c0_10 = arith.constant 0 : index
    %10 = vector.load %arg5[%c0_9, %c0_10] : memref<1x15xf32, #tpu.memory_space<vmem>>, vector<1x15xf32>
    %11 = vector.broadcast %10 : vector<1x15xf32> to vector<2x15xf32>
    %12 = arith.addf %9, %11 : vector<2x15xf32>
    %c0_11 = arith.constant 0 : index
    %c0_12 = arith.constant 0 : index
    %13 = vector.load %arg6[%c0_11, %c0_12] : memref<2x15xf32, #tpu.memory_space<vmem>>, vector<2x15xf32>
    tpu.vector_store %arg6[%c0_11, %c0_12], %12 {strides = array<i32>} : memref<2x15xf32, #tpu.memory_space<vmem>>, vector<2x15xf32>,
    return
  }
  func.func @transform_0(%arg0: i32) -> (i32, i32) {
    %c0_i32 = arith.constant 0 : i32
    %c0_i32_0 = arith.constant 0 : i32
    return %arg0, %c0_i32 : i32, i32
  }
  func.func @transform_1(%arg0: i32) -> (i32, i32) {
    %c0_i32 = arith.constant 0 : i32
    %c0_i32_0 = arith.constant 0 : i32
    %c0_i32_1 = arith.constant 0 : i32
    return %c0_i32, %c0_i32_0 : i32, i32
  }
  func.func @transform_2(%arg0: i32) -> (i32, i32) {
    %c0_i32 = arith.constant 0 : i32
    %c0_i32_0 = arith.constant 0 : i32
    %c0_i32_1 = arith.constant 0 : i32
    return %c0_i32, %c0_i32_0 : i32, i32
  }
  func.func @transform_3(%arg0: i32) -> (i32, i32) {
    %c0_i32 = arith.constant 0 : i32
    %c0_i32_0 = arith.constant 0 : i32
    %c0_i32_1 = arith.constant 0 : i32
    return %c0_i32, %c0_i32_0 : i32, i32
  }
  func.func @transform_4(%arg0: i32) -> (i32, i32) {
    %c0_i32 = arith.constant 0 : i32
    %c0_i32_0 = arith.constant 0 : i32
    %c0_i32_1 = arith.constant 0 : i32
    return %c0_i32, %c0_i32_0 : i32, i32
  }
  func.func @transform_5(%arg0: i32) -> (i32, i32) {
    %c0_i32 = arith.constant 0 : i32
    %c0_i32_0 = arith.constant 0 : i32
    return %arg0, %c0_i32 : i32, i32
  }
}

</mosaic_0001>

<bundles_post_ra>
// kernel: conv_multiview_forward.1
= control target key start
LH: loop header
LB: loop body
LE: loop exit
PB: predicated region body
PF: predicated region fallthrough
CT: control target
= control target key end

     0   :  { %vm162_vm0 = vcmask 1043456   ;;  %s455_s0 = inlined_call_operand.vmem [shape: f32[2,384], index: 0, kind: input, shape index: {}]   ;;  %s456_s1 = inlined_call_operand.vmem [shape: f32[384,84], index: 1, kind: input, shape index: {}]   ;;  %s457_s2 = inlined_call_operand.vmem [shape: f32[1,84], index: 2, kind: input, shape index: {}]   ;;  %s458_s3 = inlined_call_operand.vmem [shape: f32[84,15], index: 3, kind: input, shape index: {}]   ;;  %s459_s4 = inlined_call_operand.vmem [shape: f32[1,15], index: 4, kind: input, shape index: {}]   ;;  %s460_s5 = inlined_call_operand.hbm [shape: f32[2,15], index: 5, kind: output, shape index: {}]  }
   0x1   :  { %v69_v0 = vld [vmem:[%s456_s1 + $0x178] sm:$0xff]  ;;  %v68_v2 = vld [vmem:[%s456_s1 + $0x170] sm:$0xff]  ;;  %v67_v5 = vld [vmem:[%s456_s1 + $0x168] sm:$0xff] }
   0x2   :  { %v37_v1 = vld [vmem:[%s456_s1 + $0x78] sm:$0xff]  ;;  %122 = vmatpush.msra.mxu2 %v69_v0  ;;  %v36_v3 = vld [vmem:[%s456_s1 + $0x70] sm:$0xff]  ;;  %v35_v6 = vld [vmem:[%s456_s1 + $0x68] sm:$0xff] }
   0x3   :  { %82 = vmatpush.msra.mxu0 %v37_v1  ;;  %v53_v4 = vld [vmem:[%s456_s1 + $0xf8] sm:$0xff]  ;;  %v52_v7 = vld [vmem:[%s456_s1 + $0xf0] sm:$0xff]  ;;  %v51_v8 = vld [vmem:[%s456_s1 + $0xe8] sm:$0xff] }
   0x4   :  { %102 = vmatpush.msra.mxu1 %v53_v4  ;;  %123 = vmatpush.msra.mxu2 %v68_v2  ;;  %v66_v9 = vld [vmem:[%s456_s1 + $0x160] sm:$0xff]  ;;  %v65_v12 = vld [vmem:[%s456_s1 + $0x158] sm:$0xff]  ;;  %v64_v15 = vld [vmem:[%s456_s1 + $0x150] sm:$0xff] }
   0x5   :  { %83 = vmatpush.msra.mxu0 %v36_v3  ;;  %v34_v10 = vld [vmem:[%s456_s1 + $0x60] sm:$0xff]  ;;  %v33_v13 = vld [vmem:[%s456_s1 + $0x58] sm:$0xff]  ;;  %v32_v16 = vld [vmem:[%s456_s1 + $0x50] sm:$0xff] }
   0x6   :  { %103 = vmatpush.msra.mxu1 %v52_v7  ;;  %124 = vmatpush.msra.mxu2 %v67_v5  ;;  %v50_v11 = vld [vmem:[%s456_s1 + $0xe0] sm:$0xff]  ;;  %v49_v14 = vld [vmem:[%s456_s1 + $0xd8] sm:$0xff]  ;;  %v48_v17 = vld [vmem:[%s456_s1 + $0xd0] sm:$0xff] }
   0x7   :  { %84 = vmatpush.msra.mxu0 %v35_v6  ;;  %v63_v18 = vld [vmem:[%s456_s1 + $0x148] sm:$0xff]  ;;  %v62_v21 = vld [vmem:[%s456_s1 + $0x140] sm:$0xff]  ;;  %v61_v24 = vld [vmem:[%s456_s1 + $0x138] sm:$0xff] }
   0x8   :  { %104 = vmatpush.msra.mxu1 %v51_v8  ;;  %125 = vmatpush.msra.mxu2 %v66_v9  ;;  %v31_v19 = vld [vmem:[%s456_s1 + $0x48] sm:$0xff]  ;;  %v30_v22 = vld [vmem:[%s456_s1 + $0x40] sm:$0xff]  ;;  %v29_v25 = vld [vmem:[%s456_s1 + $0x38] sm:$0xff] }
   0x9   :  { %85 = vmatpush.msra.mxu0 %v34_v10  ;;  %v47_v20 = vld [vmem:[%s456_s1 + $0xc8] sm:$0xff]  ;;  %v46_v23 = vld [vmem:[%s456_s1 + $0xc0] sm:$0xff]  ;;  %v45_v26 = vld [vmem:[%s456_s1 + $0xb8] sm:$0xff] }
   0xa   :  { %105 = vmatpush.msra.mxu1 %v50_v11  ;;  %126 = vmatpush.msra.mxu2 %v65_v12  ;;  %v21_v27 = vld [vmem:[%s455_s0] sm:$0x3f]  ;;  %v60_v28 = vld [vmem:[%s456_s1 + $0x130] sm:$0xff]  ;;  %v59_v31 = vld [vmem:[%s456_s1 + $0x128] sm:$0xff] }
   0xb   :  { %86 = vmatpush.msra.mxu0 %v33_v13  ;;  %v28_v29 = vld [vmem:[%s456_s1 + $0x30] sm:$0xff]  ;;  %75 = vst [vmem:[#allocation1] ss:$4 sm:$0xff] %v21_v27  ;;  %v152_v33 = vld [vmem:[%s458_s3 + $0x48] sm:$0xff]  ;;  %v151_v36 = vld [vmem:[%s458_s3 + $0x40] sm:$0xff] }
   0xc   :  { %106 = vmatpush.msra.mxu1 %v49_v14  ;;  %127 = vmatpush.msra.mxu2 %v64_v15  ;;  %v153_v30 = vld [vmem:[%s458_s3 + $0x50] sm:$0xf]  ;;  %v27_v34 = vld [vmem:[%s456_s1 + $0x28] sm:$0xff] }
   0xd   :  { %87 = vmatpush.msra.mxu0 %v32_v16  ;;  %v44_v32 = vld [vmem:[%s456_s1 + $0xb0] sm:$0xff]  ;;  %v43_v35 = vld [vmem:[%s456_s1 + $0xa8] sm:$0xff]  ;;  %204 = vmatpush.msk.msra.mxu3 %vm162_vm0, %v153_v30 }
   0xe   :  { %107 = vmatpush.msra.mxu1 %v48_v17  ;;  %128 = vmatpush.msra.mxu2 %v63_v18 }
   0xf   :  { %88 = vmatpush.msra.mxu0 %v31_v19 }
  0x10   :  { %108 = vmatpush.msra.mxu1 %v47_v20  ;;  %129 = vmatpush.msra.mxu2 %v62_v21 }
  0x11   :  { %89 = vmatpush.msra.mxu0 %v30_v22 }
  0x12   :  { %109 = vmatpush.msra.mxu1 %v46_v23  ;;  %130 = vmatpush.msra.mxu2 %v61_v24 }
  0x13   :  { %90 = vmatpush.msra.mxu0 %v29_v25 }
  0x14   :  { %110 = vmatpush.msra.mxu1 %v45_v26  ;;  %131 = vmatpush.msra.mxu2 %v60_v28 }
  0x15   :  { %91 = vmatpush.msra.mxu0 %v28_v29 }
  0x16   :  { %10 = vsyncpa [#allocation3], 0  ;;  %111 = vmatpush.msra.mxu1 %v44_v32  ;;  %v58_v37 = vld [vmem:[%s456_s1 + $0x120] sm:$0xff]  ;;  %172 = vmatpush.msra.mxu3 %v152_v33  ;;  %v150_v40 = vld [vmem:[%s458_s3 + $0x38] sm:$0xff]  ;;  %vm158_vm1 = vcmask 687104   ;;  %s235_s13 = smov [#allocation2]  }
  0x17   :  { %v26_v38 = vld [vmem:[%s456_s1 + $0x20] sm:$0xff]  ;;  %132 = vmatpush.msra.mxu2 %v59_v31  ;;  %92 = vmatpush.msra.mxu0 %v27_v34  ;;  %v57_v41 = vld [vmem:[%s456_s1 + $0x118] sm:$0xff]  ;;  %v149_v44 = vld [vmem:[%s458_s3 + $0x30] sm:$0xff]  ;;  %s195_s16 = sshll.u32 %s460_s5, 4  ;;  %vm186_vm2 = vcmask 115712   ;;  %s196_s16 = int_to_ptr.hbm [resolvable:$true] %s195_s16 }
  0x18   :  { %v42_v39 = vld [vmem:[%s456_s1 + $0xa0] sm:$0xff]  ;;  %112 = vmatpush.msra.mxu1 %v43_v35  ;;  %v25_v42 = vld [vmem:[%s456_s1 + $0x18] sm:$0xff]  ;;  %173 = vmatpush.msra.mxu3 %v151_v36  ;;  %v56_v45 = vld [vmem:[%s456_s1 + $0x110] sm:$0xff] }
  0x19   :  { %133 = vmatpush.msra.mxu2 %v58_v37  ;;  %93 = vmatpush.msra.mxu0 %v26_v38  ;;  %v41_v43 = vld [vmem:[%s456_s1 + $0x98] sm:$0xff]  ;;  %v24_v46 = vld [vmem:[%s456_s1 + $0x10] sm:$0xff]  ;;  %v148_v48 = vld [vmem:[%s458_s3 + $0x28] sm:$0xff] }
  0x1a   :  { %113 = vmatpush.msra.mxu1 %v42_v39  ;;  %174 = vmatpush.msra.mxu3 %v150_v40  ;;  %v40_v47 = vld [vmem:[%s456_s1 + $0x90] sm:$0xff]  ;;  %v55_v49 = vld [vmem:[%s456_s1 + $0x108] sm:$0xff]  ;;  %v54_v52 = vld [vmem:[%s456_s1 + $0x100] sm:$0xff] }
  0x1b   :  { %134 = vmatpush.msra.mxu2 %v57_v41  ;;  %94 = vmatpush.msra.mxu0 %v25_v42  ;;  %v23_v50 = vld [vmem:[%s456_s1 + $0x8] sm:$0xff]  ;;  %v22_v53 = vld [vmem:[%s456_s1] sm:$0xff]  ;;  %v78_v54 = vld.sshfl [vmem:[#allocation1 + $0x10] sm:$0xff pattern:$0x73625140] }
  0x1c   :  { %114 = vmatpush.msra.mxu1 %v41_v43  ;;  %175 = vmatpush.msra.mxu3 %v149_v44  ;;  %v39_v51 = vld [vmem:[%s456_s1 + $0x88] sm:$0xff]  ;;  %v76_v55 = vld.sshfl [vmem:[#allocation1] sm:$0xff pattern:$0x73625140]  ;;  %v146_v59 = vld [vmem:[%s458_s3 + $0x18] sm:$0xff] }
  0x1d   :  { %135 = vmatpush.msra.mxu2 %v56_v45  ;;  %95 = vmatpush.msra.mxu0 %v24_v46  ;;  %v38_v56 = vld [vmem:[%s456_s1 + $0x80] sm:$0xff]  ;;  %v77_v57 = vld.sshfl [vmem:[#allocation1 + $0x8] sm:$0xff pattern:$0x73625140]  ;;  %v145_v60 = vld [vmem:[%s458_s3 + $0x10] sm:$0xff] }
  0x1e   :  { %115 = vmatpush.msra.mxu1 %v40_v47  ;;  %176 = vmatpush.msra.mxu3 %v148_v48  ;;  %v147_v58 = vld [vmem:[%s458_s3 + $0x20] sm:$0xff]  ;;  %v144_v61 = vld [vmem:[%s458_s3 + $0x8] sm:$0xff] }
  0x1f   :  { %136 = vmatpush.msra.mxu2 %v55_v49  ;;  %96 = vmatpush.msra.mxu0 %v23_v50  ;;  %v143_v62 = vld [vmem:[%s458_s3] sm:$0xff]  ;;  %s193_s3 = sshll.u32 %s235_s13, 4  ;;  %s194_s3 = int_to_ptr.vmem [resolvable:$true] %s193_s3 }
  0x20   :  { %116 = vmatpush.msra.mxu1 %v39_v51  ;;  %177 = vmatpush.msra.mxu3 %v147_v58  ;;  %v207_v63 = vld [vmem:[%s457_s2] ss:$0 sm:$0xff] }
  0x21   :  { %137 = vmatpush.msra.mxu2 %v54_v52  ;;  %97 = vmatpush.msra.mxu0 %v22_v53  ;;  %v208_v7 = vld [vmem:[%s459_s4] ss:$0 sm:$0xff] }
  0x22   :  { %138 = vmatmul.f32.vlgmr.msra.gmra.mxu2 %v78_v54  ;;  %98 = vmatmul.f32.vlgmr.msra.gmra.mxu0 %v76_v55 }
  0x23   :  { %117 = vmatpush.msra.mxu1 %v38_v56  ;;  %178 = vmatpush.msra.mxu3 %v146_v59 }
  0x24   :  { %118 = vmatmul.f32.vlgmr.msra.gmra.mxu1 %v77_v57 }
  0x25   :  { %179 = vmatpush.msra.mxu3 %v145_v60 }
  0x27   :  { %180 = vmatpush.msra.mxu3 %v144_v61 }
  0x29   :  { %181 = vmatpush.msra.mxu3 %v143_v62 }
  0x9f   :  { %v99_v0 = vpop.f32.mrf.mxu0 }
  0xa0   :  { %v100_v1 = vadd.f32 %v207_v63, %v99_v0 }
  0xa1   :  { %v119_v2 = vpop.f32.mrf.mxu1 }
  0xa2   :  { %v120_v3 = vadd.f32 %v119_v2, %v100_v1 }
  0xa5   :  { %v139_v4 = vpop.f32.mrf.mxu2 }
  0xa6   :  { %v140_v5 = vadd.f32 %v139_v4, %v120_v3 }
  0xa8   :  { %v142_v6 = vmax.f32 %v140_v5, 0.0 }
  0xaa   :  { %205 = vmatmul.msk.f32.vlgmr.msra.gmra.mxu3 %vm158_vm1, %v142_v6 }
 0x12d   :  { %v183_v8 = vpop.f32.mrf.mxu3 }
 0x12e   :  { %v184_v9 = vadd.f32 %v208_v7, %v183_v8 }
 0x130   :  { %187 = vst.msk [vmem:[#allocation2] sm:$0x3] %vm186_vm2, %v184_v9 }
 0x131   :  { %198 = dma.vmem_to_hbm [thread:$0]  %s194_s3, 32, %s196_s16, [#allocation3]  }
 0x132   :  { %233 = dma.done.wait [#allocation3], 32  }
 0x133   :  { %234 = vsyncadd [#allocation3], 4294967264 }
 0x134   :  { %203 = vsyncpa [#allocation3], 1 }

</bundles_post_ra>
